<compile_context>
chip_gen: v7x
topology: tpu7x:2x2x1
jax: 0.10.0
libtpu: 0.0.40
codegen_flags: <defaults>
</compile_context>

<pallas_src>
import functools

import jax
import jax.numpy as jnp
from jax.experimental import pallas as pl
from jax.experimental.pallas import tpu as pltpu


def _round_up(n, m):
    return (n + m - 1) // m * m


# ----------------------------- Pallas kernel -------------------------------


def _attention_block_kernel(scale, cnt_ref, x_ref, w1_ref, b1_ref, w2_ref, o_ref):
    """Fused AttentionBlock forward for a (GT, MAXN, D) tile of padded groups."""
    gt, maxn, d = x_ref.shape

    # Flatten the group tile so both matmuls run as one (GT*MAXN, D) @ (D, D)
    # MXU pass (fills sublanes instead of one tiny matmul per group).
    x = x_ref[...].reshape(gt * maxn, d)

    # fc1: h = x @ W1 + b1
    h = jnp.dot(x, w1_ref[...], preferred_element_type=jnp.float32) + b1_ref[...]
    # fc2(tanh(h)) * scale   (fc2 has no bias)
    s = jnp.dot(jnp.tanh(h), w2_ref[...],
                preferred_element_type=jnp.float32) * scale

    h = h.reshape(gt, maxn, d)
    s = s.reshape(gt, maxn, d)

    # Mask padded rows out of the per-group softmax over the row (dim-0) axis.
    cnt = cnt_ref[...].reshape(gt, 1, 1)                    # (GT, 1, 1) int32
    row = jax.lax.broadcasted_iota(jnp.int32, (gt, maxn, d), 1)
    valid = row < cnt
    neg = jnp.float32(jnp.finfo(jnp.float32).min / 2)       # dtype-aware finite min
    s = jnp.where(valid, s, neg)

    m = jnp.max(s, axis=1, keepdims=True)
    p = jnp.where(valid, jnp.exp(s - m), 0.0)               # re-mask: no NaN if cnt == 0
    denom = jnp.maximum(jnp.sum(p, axis=1, keepdims=True), 1e-30)

    # sum over rows of h * softmax-weight -> lane-dense (GT, D) store
    o_ref[...] = jnp.sum(h * p, axis=1) / denom[:, 0, :]


# ------------------------------- wrappers -----------------------------------


def attention_block_batched(x_padded, counts, w1, b1, w2, scale, block_g=8):
    """Apply AttentionBlock independently to G padded groups.

    x_padded: [G, MAXN, D] f32, counts: [G] int (valid rows per group) -> [G, D].
    """
    g, maxn, d = x_padded.shape

    # Pad the row axis to a sublane multiple and the group axis to the group tile.
    maxn_p = _round_up(max(maxn, 8), 8)
    gt = block_g if g >= block_g else g
    g_p = _round_up(g, gt)
    if (g_p, maxn_p) != (g, maxn):
        x_padded = jnp.pad(x_padded, ((0, g_p - g), (0, maxn_p - maxn), (0, 0)))
        counts = jnp.pad(counts, (0, g_p - g))
    counts2 = counts.astype(jnp.int32).reshape(g_p, 1)

    out = pl.pallas_call(
        functools.partial(_attention_block_kernel, float(scale)),
        out_shape=jax.ShapeDtypeStruct((g_p, d), jnp.float32),
        grid=(g_p // gt,),
        in_specs=[
            pl.BlockSpec((gt, 1), lambda i: (i, 0)),             # counts
            pl.BlockSpec((gt, maxn_p, d), lambda i: (i, 0, 0)),  # x tile
            pl.BlockSpec((d, d), lambda i: (0, 0)),              # W1 (VMEM-resident)
            pl.BlockSpec((1, d), lambda i: (0, 0)),              # b1
            pl.BlockSpec((d, d), lambda i: (0, 0)),              # W2
        ],
        out_specs=pl.BlockSpec((gt, d), lambda i: (i, 0)),       # lane-dense slab
        compiler_params=pltpu.CompilerParams(
            dimension_semantics=("parallel",)),                  # shards across v7x TCs
    )(counts2, x_padded, w1, b1.reshape(1, d), w2)
    return out[:g]


def attention_block(x, w1, b1, w2, scale):
    """Exact AttentionBlock.forward semantics: x [N, D] -> [D]."""
    n, _ = x.shape
    out = attention_block_batched(x[None], jnp.array([n], jnp.int32),
                                  w1, b1, w2, scale, block_g=1)
    return out[0]


def attention_block_ref(x, w1, b1, w2, scale):
    """Pure-JAX replica of the PyTorch forward (for verification)."""
    h = x @ w1 + b1
    w = jax.nn.softmax(jnp.tanh(h) @ w2 * scale, axis=0)
    return jnp.sum(h * w, axis=0)


# --------------------------------- main -------------------------------------


if __name__ == "__main__":
    key = jax.random.PRNGKey(0)
    input_size = 32          # AttentionBlock(input_size)
    scale = 0.8              # default scale
    keys = jax.random.split(key, 5)

    # fc1 (weight + bias), fc2 (weight only), stored as [in, out]
    w1 = jax.random.normal(keys[0], (input_size, input_size), jnp.float32) * 0.1
    b1 = jax.random.normal(keys[1], (input_size,), jnp.float32) * 0.1
    w2 = jax.random.normal(keys[2], (input_size, input_size), jnp.float32) * 0.1

    # --- single call: the literal nn.Module forward, x [N, D] -> [D] ----------
    n = 8
    x = jax.random.normal(keys[3], (n, input_size), jnp.float32)
    out_single = jax.block_until_ready(attention_block(x, w1, b1, w2, scale))
    ref_single = attention_block_ref(x, w1, b1, w2, scale)
    assert out_single.shape == (input_size,)
    assert jnp.allclose(out_single, ref_single, rtol=1e-4, atol=1e-5), (
        f"single mismatch: max abs err = {jnp.max(jnp.abs(out_single - ref_single))}")

    # --- batched call: 16 variable-length groups, 8 groups per grid step ------
    g, maxn = 16, 8
    counts_list = [3, 5, 8, 1, 7, 4, 2, 6, 8, 8, 1, 2, 5, 6, 7, 3]
    x_groups = jax.random.normal(keys[4], (g, maxn, input_size), jnp.float32)
    counts = jnp.array(counts_list, jnp.int32)

    out_batched = jax.block_until_ready(
        attention_block_batched(x_groups, counts, w1, b1, w2, scale, block_g=8))
    assert out_batched.shape == (g, input_size)
    for i, c in enumerate(counts_list):
        ref_i = attention_block_ref(x_groups[i, :c], w1, b1, w2, scale)
        assert jnp.allclose(out_batched[i], ref_i, rtol=1e-4, atol=1e-5), (
            f"group {i} mismatch: max abs err = {jnp.max(jnp.abs(out_batched[i] - ref_i))}")

    print("KERNEL_OK")
</pallas_src>

<mosaic_0001>
module attributes {stable_mosaic.version = 11 : i64} {
  func.func @_attention_block_kernel(%arg0: i32, %arg1: memref<1x1xi32, #tpu.memory_space<vmem>>, %arg2: memref<1x8x32xf32, #tpu.memory_space<vmem>>, %arg3: memref<32x32xf32, #tpu.memory_space<vmem>>, %arg4: memref<1x32xf32, #tpu.memory_space<vmem>>, %arg5: memref<32x32xf32, #tpu.memory_space<vmem>>, %arg6: memref<1x32xf32, #tpu.memory_space<vmem>>) attributes {dimension_semantics = [#tpu.dimension_semantics<parallel>], iteration_bounds = array<i64: 1>, scalar_prefetch = 0 : i64, scratch_operands = 0 : i64, tpu.core_type = #tpu.core_type<tc>, window_params = [{transform_indices = @transform_0, window_bounds = array<i64: 1, 1>}, {transform_indices = @transform_1, window_bounds = array<i64: 1, 8, 32>}, {pipeline_mode = #tpu.pipeline_mode<synchronous>, transform_indices = @transform_2, window_bounds = array<i64: 32, 32>}, {pipeline_mode = #tpu.pipeline_mode<synchronous>, transform_indices = @transform_3, window_bounds = array<i64: 1, 32>}, {pipeline_mode = #tpu.pipeline_mode<synchronous>, transform_indices = @transform_4, window_bounds = array<i64: 32, 32>}, {transform_indices = @transform_5, window_bounds = array<i64: 1, 32>}]} {
    %c0 = arith.constant 0 : index
    %c0_0 = arith.constant 0 : index
    %c0_1 = arith.constant 0 : index
    %0 = vector.load %arg2[%c0, %c0_0, %c0_1] : memref<1x8x32xf32, #tpu.memory_space<vmem>>, vector<1x8x32xf32>
    %1 = vector.shape_cast %0 : vector<1x8x32xf32> to vector<8x32xf32>
    %c0_2 = arith.constant 0 : index
    %c0_3 = arith.constant 0 : index
    %2 = vector.load %arg3[%c0_2, %c0_3] : memref<32x32xf32, #tpu.memory_space<vmem>>, vector<32x32xf32>
    %cst = arith.constant dense<0.000000e+00> : vector<8x32xf32>
    %3 = tpu.matmul %1, %2, %cst {dimension_numbers = #tpu.dot_dimension_numbers<[1], [0], [0], [1], [0, 0, 1, 1], [], []>} : vector<8x32xf32>, vector<32x32xf32>, vector<8x32xf32> -> vector<8x32xf32>
    %c0_4 = arith.constant 0 : index
    %c0_5 = arith.constant 0 : index
    %4 = vector.load %arg4[%c0_4, %c0_5] : memref<1x32xf32, #tpu.memory_space<vmem>>, vector<1x32xf32>
    %5 = vector.broadcast %4 : vector<1x32xf32> to vector<8x32xf32>
    %6 = arith.addf %3, %5 : vector<8x32xf32>
    %7 = math.tanh %6 : vector<8x32xf32>
    %c0_6 = arith.constant 0 : index
    %c0_7 = arith.constant 0 : index
    %8 = vector.load %arg5[%c0_6, %c0_7] : memref<32x32xf32, #tpu.memory_space<vmem>>, vector<32x32xf32>
    %cst_8 = arith.constant dense<0.000000e+00> : vector<8x32xf32>
    %9 = tpu.matmul %7, %8, %cst_8 {dimension_numbers = #tpu.dot_dimension_numbers<[1], [0], [0], [1], [0, 0, 1, 1], [], []>} : vector<8x32xf32>, vector<32x32xf32>, vector<8x32xf32> -> vector<8x32xf32>
    %cst_9 = arith.constant 8.000000e-01 : f32
    %10 = vector.broadcast %cst_9 : f32 to vector<8x32xf32>
    %11 = arith.mulf %9, %10 : vector<8x32xf32>
    %12 = vector.shape_cast %6 : vector<8x32xf32> to vector<1x8x32xf32>
    %13 = vector.shape_cast %11 : vector<8x32xf32> to vector<1x8x32xf32>
    %c0_10 = arith.constant 0 : index
    %c0_11 = arith.constant 0 : index
    %14 = vector.load %arg1[%c0_10, %c0_11] : memref<1x1xi32, #tpu.memory_space<vmem>>, vector<1x1xi32>
    %15 = vector.shape_cast %14 : vector<1x1xi32> to vector<1x1x1xi32>
    %16 = tpu.iota {dimensions = array<i32: 1>} : vector<1x8x32xi32>
    %17 = vector.broadcast %15 : vector<1x1x1xi32> to vector<1x8x32xi32>
    %18 = arith.cmpi slt, %16, %17 : vector<1x8x32xi32>
    %cst_12 = arith.constant -1.70141173E+38 : f32
    %19 = vector.broadcast %cst_12 : f32 to vector<1x8x32xf32>
    %20 = arith.select %18, %13, %19 : vector<1x8x32xi1>, vector<1x8x32xf32>
    %cst_13 = arith.constant dense<0xFF800000> : vector<1x32xf32>
    %21 = vector.multi_reduction <maximumf>, %20, %cst_13 [1] : vector<1x8x32xf32> to vector<1x32xf32>
    %22 = vector.shape_cast %21 : vector<1x32xf32> to vector<1x1x32xf32>
    %23 = vector.broadcast %22 : vector<1x1x32xf32> to vector<1x8x32xf32>
    %24 = arith.subf %20, %23 : vector<1x8x32xf32>
    %25 = math.exp %24 : vector<1x8x32xf32>
    %cst_14 = arith.constant 0.000000e+00 : f32
    %26 = vector.broadcast %cst_14 : f32 to vector<1x8x32xf32>
    %27 = arith.select %18, %25, %26 : vector<1x8x32xi1>, vector<1x8x32xf32>
    %cst_15 = arith.constant dense<0.000000e+00> : vector<1x32xf32>
    %28 = vector.multi_reduction <add>, %27, %cst_15 [1] : vector<1x8x32xf32> to vector<1x32xf32>
    %29 = vector.shape_cast %28 : vector<1x32xf32> to vector<1x1x32xf32>
    %cst_16 = arith.constant 1.000000e-30 : f32
    %30 = vector.broadcast %cst_16 : f32 to vector<1x1x32xf32>
    %31 = arith.maximumf %29, %30 : vector<1x1x32xf32>
    %32 = arith.mulf %12, %27 : vector<1x8x32xf32>
    %cst_17 = arith.constant dense<0.000000e+00> : vector<1x32xf32>
    %33 = vector.multi_reduction <add>, %32, %cst_17 [1] : vector<1x8x32xf32> to vector<1x32xf32>
    %34 = vector.shape_cast %31 : vector<1x1x32xf32> to vector<1x32xf32>
    %35 = arith.divf %33, %34 : vector<1x32xf32>
    %c0_18 = arith.constant 0 : index
    %c0_19 = arith.constant 0 : index
    %36 = vector.load %arg6[%c0_18, %c0_19] : memref<1x32xf32, #tpu.memory_space<vmem>>, vector<1x32xf32>
    tpu.vector_store %arg6[%c0_18, %c0_19], %35 {strides = array<i32>} : memref<1x32xf32, #tpu.memory_space<vmem>>, vector<1x32xf32>,
    return
  }
  func.func @transform_0(%arg0: i32) -> (i32, i32) {
    %c0_i32 = arith.constant 0 : i32
    %c0_i32_0 = arith.constant 0 : i32
    return %arg0, %c0_i32 : i32, i32
  }
  func.func @transform_1(%arg0: i32) -> (i32, i32, i32) {
    %c0_i32 = arith.constant 0 : i32
    %c0_i32_0 = arith.constant 0 : i32
    %c0_i32_1 = arith.constant 0 : i32
    return %arg0, %c0_i32, %c0_i32_0 : i32, i32, i32
  }
  func.func @transform_2(%arg0: i32) -> (i32, i32) {
    %c0_i32 = arith.constant 0 : i32
    %c0_i32_0 = arith.constant 0 : i32
    %c0_i32_1 = arith.constant 0 : i32
    return %c0_i32, %c0_i32_0 : i32, i32
  }
  func.func @transform_3(%arg0: i32) -> (i32, i32) {
    %c0_i32 = arith.constant 0 : i32
    %c0_i32_0 = arith.constant 0 : i32
    %c0_i32_1 = arith.constant 0 : i32
    return %c0_i32, %c0_i32_0 : i32, i32
  }
  func.func @transform_4(%arg0: i32) -> (i32, i32) {
    %c0_i32 = arith.constant 0 : i32
    %c0_i32_0 = arith.constant 0 : i32
    %c0_i32_1 = arith.constant 0 : i32
    return %c0_i32, %c0_i32_0 : i32, i32
  }
  func.func @transform_5(%arg0: i32) -> (i32, i32) {
    %c0_i32 = arith.constant 0 : i32
    %c0_i32_0 = arith.constant 0 : i32
    return %arg0, %c0_i32 : i32, i32
  }
}

</mosaic_0001>

<bundles_post_ra>
// kernel: tpu_custom_call.1
= control target key start
LH: loop header
LB: loop body
LE: loop exit
PB: predicated region body
PF: predicated region fallthrough
CT: control target
= control target key end

     0   :  { %s550_s0 = inlined_call_operand.<no memory space> [shape: s32[1,1], index: 0, kind: input, shape index: {}]   ;;  %s551_s1 = inlined_call_operand.hbm [shape: f32[1,8,32], index: 1, kind: input, shape index: {}]   ;;  %s552_s2 = inlined_call_operand.hbm [shape: f32[32,32], index: 2, kind: input, shape index: {}]   ;;  %s553_s3 = inlined_call_operand.vmem [shape: f32[1,32], index: 3, kind: input, shape index: {}]   ;;  %s554_s4 = inlined_call_operand.hbm [shape: f32[32,32], index: 4, kind: input, shape index: {}]   ;;  %s555_s5 = inlined_call_operand.hbm [shape: f32[1,32], index: 5, kind: output, shape index: {}]  }
   0x1   :  { %v10_v0 = vstv %s550_s0 }
   0x2   :  { %11 = vst [vmem:[#allocation2] sm:$0x1] %v10_v0 }
   0x3   :  { %12 = vsyncpa [#allocation4], 0 }
   0x4   :  { %13 = vsyncpa [#allocation7], 0 }
   0x5   :  { %14 = vsyncpa [#allocation5], 0  ;;  %s445_s20 = smov [#allocation6]   ;;  %s351_s24 = scalar_lea.hbm %s552_s2, 512 }
   0x6   :  { %s32_s21 = sshll.u32 %s445_s20, 4  ;;  %p352_p0 = scmp.ne.s32.totalorder %s552_s2, %s351_s24  ;;  %s33_s21 = int_to_ptr.vmem [resolvable:$true] %s32_s21 }
   0x7   :  { %p355_p1 = scmp.lt.u32.totalorder %s351_s24, %s552_s2 }
   0x9   :  { %p357_p2 = pnand %p355_p1, %p352_p0 }
   0xb   :  { %360 = shalt.err (!%p357_p2)
}
   0xc   :  { %s361_s0 = scalar_lea.vmem %s33_s21, 512  ;;  %p366_p4 = scmp.lt.s32.totalorder %s33_s21, %s33_s21 }
   0xd   :  { %p362_p3 = scmp.ne.s32.totalorder %s33_s21, %s361_s0  ;;  %p367_p5 = scmp.lt.s32.totalorder %s361_s0, %s361_s0 }
   0xf   :  { %p368_p6 = por %p367_p5, %p366_p4 }
  0x11   :  { %p369_p7 = pnand %p368_p6, %p362_p3 }
  0x13   :  { %372 = shalt.err (!%p369_p7)
}
  0x14   :  { %s446_s29 = smov 128   ;;  %s447_s30 = smov 8  }
  0x15   :  { %38 = dma.hbm_to_vmem [thread:$0]  %s552_s2, 512, %s33_s21, [#allocation7], %s446_s29, %s446_s29, %s447_s30  }
  0x16   :  { %s448_s8 = smov [#allocation3]   ;;  %s449_s10 = smov [#allocation8]  }
  0x17   :  { %s23_s9 = sshll.u32 %s448_s8, 4  ;;  %s46_s11 = sshll.u32 %s449_s10, 4  ;;  %s24_s9 = int_to_ptr.vmem [resolvable:$true] %s23_s9  ;;  %s47_s11 = int_to_ptr.vmem [resolvable:$true] %s46_s11 }
  0x18   :  { %s373_s14 = scalar_lea.hbm %s551_s1, 128 }
  0x19   :  { %p374_p8 = scmp.ne.s32.totalorder %s551_s1, %s373_s14  ;;  %p377_p9 = scmp.lt.u32.totalorder %s373_s14, %s551_s1 }
  0x1b   :  { %p379_p10 = pnand %p377_p9, %p374_p8 }
  0x1d   :  { %382 = shalt.err (!%p379_p10)
}
  0x1e   :  { %s383_s2 = scalar_lea.vmem %s24_s9, 128  ;;  %p388_p12 = scmp.lt.s32.totalorder %s24_s9, %s24_s9 }
  0x1f   :  { %p384_p11 = scmp.ne.s32.totalorder %s24_s9, %s383_s2  ;;  %p389_p13 = scmp.lt.s32.totalorder %s383_s2, %s383_s2 }
  0x21   :  { %p390_p0 = por %p389_p13, %p388_p12 }
  0x23   :  { %p391_p1 = pnand %p390_p0, %p384_p11 }
  0x25   :  { %394 = shalt.err (!%p391_p1)
}
  0x26   :  { %26 = dma.hbm_to_vmem [thread:$0]  %s551_s1, 128, %s24_s9, [#allocation4]  }
  0x27   :  { %s395_s23 = scalar_lea.hbm %s554_s4, 512 }
  0x28   :  { %p396_p2 = scmp.ne.s32.totalorder %s554_s4, %s395_s23  ;;  %p399_p3 = scmp.lt.u32.totalorder %s395_s23, %s554_s4 }
  0x2a   :  { %p401_p4 = pnand %p399_p3, %p396_p2 }
  0x2c   :  { %404 = shalt.err (!%p401_p4)
}
  0x2d   :  { %s405_s28 = scalar_lea.vmem %s47_s11, 512  ;;  %p410_p6 = scmp.lt.s32.totalorder %s47_s11, %s47_s11 }
  0x2e   :  { %p406_p5 = scmp.ne.s32.totalorder %s47_s11, %s405_s28  ;;  %p411_p7 = scmp.lt.s32.totalorder %s405_s28, %s405_s28 }
  0x30   :  { %p412_p8 = por %p411_p7, %p410_p6 }
  0x32   :  { %p413_p9 = pnand %p412_p8, %p406_p5 }
  0x34   :  { %416 = shalt.err (!%p413_p9)
}
  0x35   :  { %52 = dma.hbm_to_vmem [thread:$0]  %s554_s4, 512, %s47_s11, [#allocation7], %s446_s29, %s446_s29, %s447_s30  }
  0x36   :  { %439 = dma.done.wait [#allocation4], 128  }
  0x37   :  { %440 = vsyncadd [#allocation4], 4294967168 }
  0x38   :  { %441 = dma.done.wait [#allocation7], 1024  }
  0x39   :  { %442 = vsyncadd [#allocation7], 4294966272  ;;  %v450_v1 = vmov 0.0|0.0   ;;  %vm451_vm0 = vmmov 0   ;;  %v452_v2 = vmov 0.0   ;;  %v63_v3 = vld [vmem:[#allocation6] sm:$0xff]  ;;  %v228_v23 = vlaneseq }
  0x3a   :  { %322 = vmatprep.subr.bf16.mxu0 %v450_v1  ;;  %308 = vmatprep.mubr.msk.f32.mxu0 %vm451_vm0, %v452_v2  ;;  %v64_v4 = vld [vmem:[#allocation6 + $0x8] sm:$0xff]  ;;  %v65_v5 = vld [vmem:[#allocation6 + $0x10] sm:$0xff]  ;;  %v66_v7 = vld [vmem:[#allocation6 + $0x18] sm:$0xff]  ;;  %vm74_vm1 = vcmask 261120   ;;  %v453_v17 = vmov 0   ;;  %vm268_vm3 = vcmask 253952  }
  0x3b   :  { %328 = vmatprep.subr.bf16.mxu1 %v450_v1  ;;  %319 = vmatprep.mubr.msk.f32.mxu1 %vm451_vm0, %v452_v2  ;;  %v323_v6 = vpack.c.bf16 %v64_v4, %v63_v3  ;;  %v326_v8 = vpack.c.bf16 %v66_v7, %v65_v5  ;;  %v62_v9 = vld [vmem:[#allocation3] sm:$0xff]  ;;  %v149_v10 = vld [vmem:[#allocation8] sm:$0xff]  ;;  %v150_v11 = vld [vmem:[#allocation8 + $0x8] sm:$0xff]  ;;  %v229_v24 = vshrl.u32 %v228_v23, 7 }
  0x3c   :  { %v151_v12 = vld [vmem:[#allocation8 + $0x10] sm:$0xff]  ;;  %v329_v13 = vpack.c.bf16 %v150_v11, %v149_v10  ;;  %v152_v14 = vld [vmem:[#allocation8 + $0x18] sm:$0xff]  ;;  %344 = vset.pattern.permute.xlu0 %v453_v17 }
  0x3d   :  { %324 = vmatpush3.bf16.msra.mxu0 %v323_v6  ;;  %v332_v15 = vpack.c.bf16 %v152_v14, %v151_v12  ;;  %v289_v16 = vld [vmem:[#allocation2] ss:$0 sm:$0xff] }
  0x3e   :  { %325 = vmatprep.subr.bf16.mxu0 %v450_v1  ;;  %330 = vmatpush3.bf16.msra.mxu1 %v329_v13  ;;  %v286_v18 = vld [vmem:[%s553_s3] ss:$0 sm:$0xff]  ;;  %s454_s3 = smov [#allocation9]  }
  0x3f   :  { %331 = vmatprep.subr.bf16.mxu1 %v450_v1  ;;  %235 = vperm.xlu0 %344, %v289_v16   ;;  %s276_s30 = sshll.u32 %s454_s3, 4  ;;  %s277_s30 = int_to_ptr.vmem [resolvable:$true] %s276_s30 }
  0x40   :  { %s417_s6 = scalar_lea.vmem %s277_s30, 16  ;;  %s421_s7 = scalar_lea.vmem %s277_s30, 32 }
  0x41   :  { %327 = vmatpush3.bf16.msra.mxu0 %v326_v8  ;;  %p418_p10 = scmp.ne.s32.totalorder %s277_s30, %s417_s6  ;;  %p422_p11 = scmp.lt.s32.totalorder %s277_s30, %s277_s30 }
  0x42   :  { %333 = vmatpush3.bf16.msra.mxu1 %v332_v15  ;;  %p423_p12 = scmp.lt.s32.totalorder %s421_s7, %s417_s6 }
  0x44   :  { %309 = vmatmul.mubr.msk.f32.vlgmr.msra.gmra.mrb[0].mxu0 %vm74_vm1, %v62_v9  ;;  %p424_p13 = por %p423_p12, %p422_p11 }
  0x46   :  { %p425_p0 = pnand %p424_p13, %p418_p10 }
  0xbe   :  { %v236_v25 = vpop.permute.xlu0 %235 }
  0xbf   :  { %vm237_vm2 = vcmp.lt.s32.totalorder %v229_v24, %v236_v25 }
 0x117   :  { %v144_v19 = vpop.f32.mrb[0].mxu0 }
 0x118   :  { %v145_v20 = vadd.f32 %v286_v18, %v144_v19  ;;  %v310_v21 = vpop.f32.mrb[1].mxu0 }
 0x11a   :  { %345 = vtanh.f32 %v145_v20 }
 0x124   :  { %v346_v22 = vpop.eup %345 }
 0x125   :  { %320 = vmatmul.mubr.msk.f32.vlgmr.msra.gmra.mrb[0].mxu1 %vm74_vm1, %v346_v22 }
 0x1f8   :  { %v222_v26 = vpop.f32.mrb[0].mxu1 }
 0x1f9   :  { %v226_v27 = vmul.f32 0.8, %v222_v26  ;;  %v321_v28 = vpop.f32.mrb[1].mxu1 }
 0x1fb   :  { %v238_v29 = vsel %vm237_vm2, %v226_v27, -1.7014117e+38 }
 0x1fc   :  { %v239_v30 = vsel %vm74_vm1, %v238_v29, -inf }
 0x1fd   :  { %v240_v31 = vrot.slane %v239_v30, 4 }
 0x1ff   :  { %v241_v32 = vmax.f32 %v239_v30, %v240_v31 }
 0x201   :  { %v242_v33 = vrot.slane %v241_v32, 2 }
 0x203   :  { %v243_v34 = vmax.f32 %v241_v32, %v242_v33 }
 0x205   :  { %v244_v35 = vrot.slane %v243_v34, 1 }
 0x207   :  { %v245_v36 = vmax.f32 %v243_v34, %v244_v35 }
 0x209   :  { %v246_v37 = vsub.f32 %v238_v29, %v245_v36 }
 0x20b   :  { %v247_v38 = vmul.f32 1.442695, %v246_v37 }
 0x20d   :  { %347 = vpow2.f32 %v247_v38 }
 0x217   :  { %v348_v39 = vpop.eup %347 }
 0x218   :  { %v249_v40 = vsel %vm237_vm2, %v348_v39, 0.0 }
 0x219   :  { %v250_v41 = vsel %vm74_vm1, %v249_v40, 0.0  ;;  %v258_v42 = vmul.f32 %v249_v40, %v145_v20 }
 0x21a   :  { %v251_v43 = vrot.slane %v250_v41, 4 }
 0x21b   :  { %v259_v44 = vsel %vm74_vm1, %v258_v42, 0.0 }
 0x21c   :  { %v252_v45 = vadd.f32 %v251_v43, %v250_v41  ;;  %v260_v46 = vrot.slane %v259_v44, 4 }
 0x21e   :  { %v253_v47 = vrot.slane %v252_v45, 2  ;;  %v261_v49 = vadd.f32 %v260_v46, %v259_v44 }
 0x220   :  { %v254_v48 = vadd.f32 %v253_v47, %v252_v45  ;;  %v262_v52 = vrot.slane %v261_v49, 2 }
 0x222   :  { %v255_v50 = vrot.slane %v254_v48, 1  ;;  %v263_v54 = vadd.f32 %v262_v52, %v261_v49 }
 0x224   :  { %v256_v51 = vadd.f32 %v255_v50, %v254_v48  ;;  %v264_v55 = vrot.slane %v263_v54, 1 }
 0x226   :  { %v257_v53 = vmax.f32 %v256_v51, 1e-30  ;;  %v265_v56 = vadd.f32 %v264_v55, %v263_v54 }
 0x228   :  { %349 = vrcp.f32 %v257_v53 }
 0x232   :  { %v350_v57 = vpop.eup %349 }
 0x233   :  { %v267_v58 = vmul.f32 %v350_v57, %v265_v56 }
 0x235   :  { %269 = vst.msk [vmem:[#allocation9] sm:$0x1] %vm268_vm3, %v267_v58 }
 0x236   :  { %428 = shalt.err (!%p425_p0)
}
 0x237   :  { %s429_s10 = scalar_lea.hbm %s555_s5, 16 }
 0x238   :  { %p430_p1 = scmp.ne.s32.totalorder %s555_s5, %s429_s10  ;;  %p433_p2 = scmp.lt.u32.totalorder %s429_s10, %s555_s5 }
 0x23a   :  { %p435_p3 = pnand %p433_p2, %p430_p1 }
 0x23c   :  { %438 = shalt.err (!%p435_p3)
}
 0x23d   :  { %279 = dma.vmem_to_hbm [thread:$0]  %s277_s30, 16, %s555_s5, [#allocation5]  }
 0x23e   :  { %443 = dma.done.wait [#allocation5], 16  }
 0x23f   :  { %444 = vsyncadd [#allocation5], 4294967280 }
 0x240   :  { %283 = vsyncpa [#allocation4], 1 }
 0x241   :  { %284 = vsyncpa [#allocation7], 1 }
 0x242   :  { %285 = vsyncpa [#allocation5], 1 }

</bundles_post_ra>
